<compile_context>
chip_gen: v7x
topology: tpu7x:2x2x1
jax: 0.10.0
libtpu: 0.0.40
codegen_flags: <defaults>
</compile_context>

<pallas_src>
import functools

import jax
import jax.numpy as jnp
from jax import lax
from jax.experimental import pallas as pl
from jax.experimental.pallas import tpu as pltpu

BN_EPS = 1e-5


# --------------------------------------------------------------------------- kernels
def _stats_kernel(x_ref, g_ref, sx_ref, *, nb):
    """Pass 1: per batch-group sufficient statistics of x.

    x_ref : (nb, Cin_p, thw)   native dtype
    g_ref : (Cin_p, Cin_p)     f32 accumulator  (Gram over pixels)
    sx_ref: (Cin_p, 1)         f32 accumulator  (per-channel sum)
    Accumulated across the pixel-tile grid axis (resident output blocks).
    """
    @pl.when(pl.program_id(1) == 0)
    def _():
        g_ref[...] = jnp.zeros_like(g_ref)
        sx_ref[...] = jnp.zeros_like(sx_ref)

    for b in range(nb):                                   # nb is a small static int
        xb = x_ref[b]                                      # (Cin_p, thw), no upcast
        g_ref[...] += lax.dot_general(
            xb, xb, dimension_numbers=(((1,), (1,)), ((), ())),
            preferred_element_type=jnp.float32)            # MXU: x @ x^T
        sx_ref[...] += jnp.sum(xb, axis=1, keepdims=True, dtype=jnp.float32)


def _apply_kernel(x_ref, wf_ref, shift_ref, o_ref, *, nb):
    """Pass 2: out = relu(W' @ x + shift), pixels on the lane axis.

    x_ref    : (nb, Cin_p, thw)   native dtype
    wf_ref   : (Cout_p, Cin_p)    same dtype as x (BN scale folded into W)
    shift_ref: (Cout_p, 1)        f32
    o_ref    : (nb, Cout_p, thw)  native dtype
    """
    wf = wf_ref[...]
    shift = shift_ref[...]
    for b in range(nb):
        y = jnp.dot(wf, x_ref[b], preferred_element_type=jnp.float32)
        o_ref[b] = jnp.maximum(y + shift, 0.0).astype(o_ref.dtype)


# --------------------------------------------------------------------------- helpers
def _round_up(v, m):
    return -(-v // m) * m


def _pick_tiles(hw_p, n, per_pixel_bytes, budget):
    """Pick (nb, thw): thw | hw_p (multiple of 128), largest fitting the budget; if a
    full image row fits, also block nb | n images per step to amortize step overhead."""
    n128 = hw_p // 128
    thw = 128
    for k in range(n128, 0, -1):
        if n128 % k == 0 and 128 * k * per_pixel_bytes <= budget:
            thw = 128 * k
            break
    nb = 1
    if thw == hw_p:
        for d in range(n, 0, -1):
            if n % d == 0 and d * hw_p * per_pixel_bytes <= budget:
                nb = d
                break
    return nb, thw


# --------------------------------------------------------------------------- wrapper
def conv2d_bn_relu(x_nchw, weight_oihw, gamma, beta, eps=BN_EPS):
    """Forward of the SCSNet Conv2d block (1x1 conv, no bias, BN train-mode, ReLU)."""
    N, Cin, H, W = x_nchw.shape
    Cout = weight_oihw.shape[0]
    assert weight_oihw.shape == (Cout, Cin, 1, 1)

    dtype = x_nchw.dtype
    eb = jnp.dtype(dtype).itemsize
    sub = max(8, 32 // eb)                    # sublane tile: 8 (f32) / 16 (bf16) / 32 (i8)

    HW = H * W
    HW_p = _round_up(HW, 128)
    Cin_p = _round_up(Cin, sub)
    Cout_p = _round_up(Cout, sub)

    # Layout plumbing only: contiguous reshape + zero padding (padded channels/pixels
    # contribute exactly zero to the BN sums; padded outputs are sliced off).
    x3 = x_nchw.reshape(N, Cin, HW)
    x3 = jnp.pad(x3, ((0, 0), (0, Cin_p - Cin), (0, HW_p - HW)))
    w2 = jnp.pad(weight_oihw.reshape(Cout, Cin).astype(jnp.float32),
                 ((0, Cout_p - Cout), (0, Cin_p - Cin)))
    g1 = jnp.pad(gamma.astype(jnp.float32), (0, Cout_p - Cout), constant_values=1.0)
    b1 = jnp.pad(beta.astype(jnp.float32), (0, Cout_p - Cout))

    # Generation-aware VMEM budgets (v5e/v6e: 128 MiB, v7x: 64 MiB physical).
    try:
        vmem_cap = int(pltpu.get_tpu_info().vmem_capacity_bytes)
    except Exception:  # pragma: no cover - conservative fallback
        vmem_cap = 64 << 20
    tile_budget = min(24 << 20, vmem_cap // 4)

    def _vmem_limit(step_bytes):
        return int(min(0.7 * vmem_cap, max(32 << 20, 3 * step_bytes)))

    # Per-pixel (per image in the block) byte costs: double-buffered tiles + f32 temps.
    per_px1 = 2 * Cin_p * eb + 4 * Cin_p                       # pass 1: input tile only
    per_px2 = 2 * (Cin_p + Cout_p) * eb + 4 * Cout_p           # pass 2: input + output tile
    nb1, thw1 = _pick_tiles(HW_p, N, per_px1, tile_budget)
    nb2, thw2 = _pick_tiles(HW_p, N, per_px2, tile_budget)

    # --- Pass 1: x-only sufficient statistics, parallel over batch groups. ---
    G1 = N // nb1
    gram, sx = pl.pallas_call(
        functools.partial(_stats_kernel, nb=nb1),
        out_shape=(jax.ShapeDtypeStruct((G1, Cin_p, Cin_p), jnp.float32),
                   jax.ShapeDtypeStruct((G1, Cin_p, 1), jnp.float32)),
        grid=(G1, HW_p // thw1),
        in_specs=[pl.BlockSpec((nb1, Cin_p, thw1), lambda g, j: (g, 0, j))],
        out_specs=(pl.BlockSpec((None, Cin_p, Cin_p), lambda g, j: (g, 0, 0)),
                   pl.BlockSpec((None, Cin_p, 1), lambda g, j: (g, 0, 0))),
        compiler_params=pltpu.CompilerParams(
            dimension_semantics=("parallel", "arbitrary"),
            vmem_limit_bytes=_vmem_limit(nb1 * thw1 * per_px1)),
    )(x3)

    # --- BN fold in plain JAX (tiny O(Cout*Cin) work): derive mean / E[y^2] from the
    #     x statistics, then fold into (W', shift). ---
    # TODO(synk): E[y^2]-E[y]^2 in f32 can lose precision vs PyTorch's centered variance
    # for very large N*H*W / large post-conv means; compensated accumulation would fix it.
    inv_m = 1.0 / float(N * HW)                       # exact count (padding excluded)
    g_tot = jnp.sum(gram, axis=0)                     # (Cin_p, Cin_p)
    sx_tot = jnp.sum(sx, axis=0)[:, 0]                # (Cin_p,)
    mean = (w2 @ sx_tot) * inv_m                      # (Cout_p,)
    ey2 = jnp.sum((w2 @ g_tot) * w2, axis=1) * inv_m  # (Cout_p,)
    var = jnp.maximum(ey2 - mean * mean, 0.0)         # biased (train-mode) variance
    rstd = lax.rsqrt(var + eps)
    scale = g1 * rstd                                 # gamma * rstd
    wf = (w2 * scale[:, None]).astype(dtype)          # (Cout_p, Cin_p), matmul dtype = x dtype
    shift = (b1 - mean * scale).reshape(Cout_p, 1)    # f32

    # --- Pass 2: tiled, pipelined matmul + affine + ReLU; fully parallel grid. ---
    G2 = N // nb2
    out3 = pl.pallas_call(
        functools.partial(_apply_kernel, nb=nb2),
        out_shape=jax.ShapeDtypeStruct((N, Cout_p, HW_p), dtype),
        grid=(G2, HW_p // thw2),
        in_specs=[pl.BlockSpec((nb2, Cin_p, thw2), lambda g, j: (g, 0, j)),
                  pl.BlockSpec((Cout_p, Cin_p), lambda g, j: (0, 0)),
                  pl.BlockSpec((Cout_p, 1), lambda g, j: (0, 0))],
        out_specs=pl.BlockSpec((nb2, Cout_p, thw2), lambda g, j: (g, 0, j)),
        compiler_params=pltpu.CompilerParams(
            dimension_semantics=("parallel", "parallel"),
            vmem_limit_bytes=_vmem_limit(nb2 * thw2 * per_px2)),
    )(x3, wf, shift)

    return out3[:, :Cout, :HW].reshape(N, Cout, H, W)


# --------------------------------------------------------------------------- demo
if __name__ == "__main__":
    # Deterministic synthetic parameters (module __init__ shapes).
    N, Cin, Cout, H, W = 2, 4, 8, 16, 16
    key = jax.random.PRNGKey(0)
    kx, kw = jax.random.split(key)

    x = jax.random.normal(kx, (N, Cin, H, W), dtype=jnp.float32)
    # nn.Conv2d weight shape: (out_ch, in_ch, 1, 1); deterministic init.
    weight = jax.random.normal(kw, (Cout, Cin, 1, 1), dtype=jnp.float32) * 0.5
    # nn.BatchNorm2d default init: gamma=1, beta=0.
    gamma = jnp.ones((Cout,), dtype=jnp.float32)
    beta = jnp.zeros((Cout,), dtype=jnp.float32)
    # TODO(synk): BatchNorm running_mean/running_var buffer updates are a training
    # side-effect that does not affect this forward's output; not reproduced.

    out = conv2d_bn_relu(x, weight, gamma, beta)
    jax.block_until_ready(out)
    assert out.shape == (N, Cout, H, W)

    # Pure-JAX reference (PyTorch semantics: 1x1 conv, BN train-mode, ReLU).
    y_ref = jnp.einsum('oc,nchw->nohw', weight.reshape(Cout, Cin), x)
    mean_r = y_ref.mean(axis=(0, 2, 3), keepdims=True)
    var_r = ((y_ref - mean_r) ** 2).mean(axis=(0, 2, 3), keepdims=True)
    ref = jnp.maximum((y_ref - mean_r) * jax.lax.rsqrt(var_r + BN_EPS)
                      * gamma.reshape(1, Cout, 1, 1) + beta.reshape(1, Cout, 1, 1), 0.0)
    assert jnp.allclose(out, ref, rtol=1e-3, atol=1e-3), float(jnp.abs(out - ref).max())

    print("KERNEL_OK")
</pallas_src>

<mosaic_0001>
module attributes {stable_mosaic.version = 11 : i64} {
  func.func @_stats_kernel(%arg0: i32, %arg1: i32, %arg2: memref<2x8x256xf32, #tpu.memory_space<vmem>>, %arg3: memref<1x8x8xf32, #tpu.memory_space<vmem>>, %arg4: memref<1x8x1xf32, #tpu.memory_space<vmem>>) attributes {dimension_semantics = [#tpu.dimension_semantics<parallel>, #tpu.dimension_semantics<arbitrary>], iteration_bounds = array<i64: 1, 1>, scalar_prefetch = 0 : i64, scratch_operands = 0 : i64, tpu.core_type = #tpu.core_type<tc>, window_params = [{transform_indices = @transform_0, window_bounds = array<i64: 2, 8, 256>}, {transform_indices = @transform_1, window_bounds = array<i64: 1, 8, 8>}, {transform_indices = @transform_2, window_bounds = array<i64: 1, 8, 1>}]} {
    %c0_i32 = arith.constant 0 : i32
    %0 = arith.cmpi eq, %arg1, %c0_i32 : i32
    %1 = arith.extui %0 : i1 to i32
    %c0_i32_0 = arith.constant 0 : i32
    %2 = arith.cmpi ne, %1, %c0_i32_0 : i32
    scf.if %2 {
      %cst_32 = arith.constant 0.000000e+00 : f32
      %37 = vector.broadcast %cst_32 : f32 to vector<8x8xf32>
      %c0_33 = arith.constant 0 : index
      %c0_34 = arith.constant 0 : index
      %c0_35 = arith.constant 0 : index
      %38 = vector.load %arg3[%c0_33, %c0_34, %c0_35] : memref<1x8x8xf32, #tpu.memory_space<vmem>>, vector<1x8x8xf32>
      %39 = vector.shape_cast %38 : vector<1x8x8xf32> to vector<8x8xf32>
      %40 = vector.shape_cast %37 : vector<8x8xf32> to vector<1x8x8xf32>
      tpu.vector_store %arg3[%c0_33, %c0_34, %c0_35], %40 {strides = array<i32>} : memref<1x8x8xf32, #tpu.memory_space<vmem>>, vector<1x8x8xf32>,
      %cst_36 = arith.constant 0.000000e+00 : f32
      %41 = vector.broadcast %cst_36 : f32 to vector<8x1xf32>
      %c0_37 = arith.constant 0 : index
      %c0_38 = arith.constant 0 : index
      %c0_39 = arith.constant 0 : index
      %42 = vector.load %arg4[%c0_37, %c0_38, %c0_39] : memref<1x8x1xf32, #tpu.memory_space<vmem>>, vector<1x8x1xf32>
      %43 = vector.shape_cast %42 : vector<1x8x1xf32> to vector<8x1xf32>
      %44 = vector.shape_cast %41 : vector<8x1xf32> to vector<1x8x1xf32>
      tpu.vector_store %arg4[%c0_37, %c0_38, %c0_39], %44 {strides = array<i32>} : memref<1x8x1xf32, #tpu.memory_space<vmem>>, vector<1x8x1xf32>,
    } else {
    }
    %c0 = arith.constant 0 : index
    %c0_1 = arith.constant 0 : index
    %c0_2 = arith.constant 0 : index
    %3 = vector.load %arg2[%c0, %c0_1, %c0_2] : memref<2x8x256xf32, #tpu.memory_space<vmem>>, vector<1x8x256xf32>
    %4 = vector.shape_cast %3 : vector<1x8x256xf32> to vector<8x256xf32>
    %c0_3 = arith.constant 0 : index
    %c0_4 = arith.constant 0 : index
    %c0_5 = arith.constant 0 : index
    %5 = vector.load %arg3[%c0_3, %c0_4, %c0_5] : memref<1x8x8xf32, #tpu.memory_space<vmem>>, vector<1x8x8xf32>
    %6 = vector.shape_cast %5 : vector<1x8x8xf32> to vector<8x8xf32>
    %cst = arith.constant dense<0.000000e+00> : vector<8x8xf32>
    %7 = tpu.matmul %4, %4, %cst {dimension_numbers = #tpu.dot_dimension_numbers<[1], [1], [0], [0], [0, 0, 1, 0], [], []>} : vector<8x256xf32>, vector<8x256xf32>, vector<8x8xf32> -> vector<8x8xf32>
    %8 = arith.addf %6, %7 : vector<8x8xf32>
    %c0_6 = arith.constant 0 : index
    %c0_7 = arith.constant 0 : index
    %c0_8 = arith.constant 0 : index
    %9 = vector.load %arg3[%c0_6, %c0_7, %c0_8] : memref<1x8x8xf32, #tpu.memory_space<vmem>>, vector<1x8x8xf32>
    %10 = vector.shape_cast %9 : vector<1x8x8xf32> to vector<8x8xf32>
    %11 = vector.shape_cast %8 : vector<8x8xf32> to vector<1x8x8xf32>
    tpu.vector_store %arg3[%c0_6, %c0_7, %c0_8], %11 {strides = array<i32>} : memref<1x8x8xf32, #tpu.memory_space<vmem>>, vector<1x8x8xf32>,
    %c0_9 = arith.constant 0 : index
    %c0_10 = arith.constant 0 : index
    %c0_11 = arith.constant 0 : index
    %12 = vector.load %arg4[%c0_9, %c0_10, %c0_11] : memref<1x8x1xf32, #tpu.memory_space<vmem>>, vector<1x8x1xf32>
    %13 = vector.shape_cast %12 : vector<1x8x1xf32> to vector<8x1xf32>
    %cst_12 = arith.constant dense<0.000000e+00> : vector<8xf32>
    %14 = vector.multi_reduction <add>, %4, %cst_12 [1] : vector<8x256xf32> to vector<8xf32>
    %15 = vector.shape_cast %14 : vector<8xf32> to vector<8x1xf32>
    %16 = arith.addf %13, %15 : vector<8x1xf32>
    %c0_13 = arith.constant 0 : index
    %c0_14 = arith.constant 0 : index
    %c0_15 = arith.constant 0 : index
    %17 = vector.load %arg4[%c0_13, %c0_14, %c0_15] : memref<1x8x1xf32, #tpu.memory_space<vmem>>, vector<1x8x1xf32>
    %18 = vector.shape_cast %17 : vector<1x8x1xf32> to vector<8x1xf32>
    %19 = vector.shape_cast %16 : vector<8x1xf32> to vector<1x8x1xf32>
    tpu.vector_store %arg4[%c0_13, %c0_14, %c0_15], %19 {strides = array<i32>} : memref<1x8x1xf32, #tpu.memory_space<vmem>>, vector<1x8x1xf32>,
    %c1 = arith.constant 1 : index
    %c0_16 = arith.constant 0 : index
    %c0_17 = arith.constant 0 : index
    %20 = vector.load %arg2[%c1, %c0_16, %c0_17] : memref<2x8x256xf32, #tpu.memory_space<vmem>>, vector<1x8x256xf32>
    %21 = vector.shape_cast %20 : vector<1x8x256xf32> to vector<8x256xf32>
    %c0_18 = arith.constant 0 : index
    %c0_19 = arith.constant 0 : index
    %c0_20 = arith.constant 0 : index
    %22 = vector.load %arg3[%c0_18, %c0_19, %c0_20] : memref<1x8x8xf32, #tpu.memory_space<vmem>>, vector<1x8x8xf32>
    %23 = vector.shape_cast %22 : vector<1x8x8xf32> to vector<8x8xf32>
    %cst_21 = arith.constant dense<0.000000e+00> : vector<8x8xf32>
    %24 = tpu.matmul %21, %21, %cst_21 {dimension_numbers = #tpu.dot_dimension_numbers<[1], [1], [0], [0], [0, 0, 1, 0], [], []>} : vector<8x256xf32>, vector<8x256xf32>, vector<8x8xf32> -> vector<8x8xf32>
    %25 = arith.addf %23, %24 : vector<8x8xf32>
    %c0_22 = arith.constant 0 : index
    %c0_23 = arith.constant 0 : index
    %c0_24 = arith.constant 0 : index
    %26 = vector.load %arg3[%c0_22, %c0_23, %c0_24] : memref<1x8x8xf32, #tpu.memory_space<vmem>>, vector<1x8x8xf32>
    %27 = vector.shape_cast %26 : vector<1x8x8xf32> to vector<8x8xf32>
    %28 = vector.shape_cast %25 : vector<8x8xf32> to vector<1x8x8xf32>
    tpu.vector_store %arg3[%c0_22, %c0_23, %c0_24], %28 {strides = array<i32>} : memref<1x8x8xf32, #tpu.memory_space<vmem>>, vector<1x8x8xf32>,
    %c0_25 = arith.constant 0 : index
    %c0_26 = arith.constant 0 : index
    %c0_27 = arith.constant 0 : index
    %29 = vector.load %arg4[%c0_25, %c0_26, %c0_27] : memref<1x8x1xf32, #tpu.memory_space<vmem>>, vector<1x8x1xf32>
    %30 = vector.shape_cast %29 : vector<1x8x1xf32> to vector<8x1xf32>
    %cst_28 = arith.constant dense<0.000000e+00> : vector<8xf32>
    %31 = vector.multi_reduction <add>, %21, %cst_28 [1] : vector<8x256xf32> to vector<8xf32>
    %32 = vector.shape_cast %31 : vector<8xf32> to vector<8x1xf32>
    %33 = arith.addf %30, %32 : vector<8x1xf32>
    %c0_29 = arith.constant 0 : index
    %c0_30 = arith.constant 0 : index
    %c0_31 = arith.constant 0 : index
    %34 = vector.load %arg4[%c0_29, %c0_30, %c0_31] : memref<1x8x1xf32, #tpu.memory_space<vmem>>, vector<1x8x1xf32>
    %35 = vector.shape_cast %34 : vector<1x8x1xf32> to vector<8x1xf32>
    %36 = vector.shape_cast %33 : vector<8x1xf32> to vector<1x8x1xf32>
    tpu.vector_store %arg4[%c0_29, %c0_30, %c0_31], %36 {strides = array<i32>} : memref<1x8x1xf32, #tpu.memory_space<vmem>>, vector<1x8x1xf32>,
    return
  }
  func.func @transform_0(%arg0: i32, %arg1: i32) -> (i32, i32, i32) {
    %c0_i32 = arith.constant 0 : i32
    %c0_i32_0 = arith.constant 0 : i32
    return %arg0, %c0_i32, %arg1 : i32, i32, i32
  }
  func.func @transform_1(%arg0: i32, %arg1: i32) -> (i32, i32, i32) {
    %c0_i32 = arith.constant 0 : i32
    %c0_i32_0 = arith.constant 0 : i32
    %c0_i32_1 = arith.constant 0 : i32
    return %arg0, %c0_i32, %c0_i32_0 : i32, i32, i32
  }
  func.func @transform_2(%arg0: i32, %arg1: i32) -> (i32, i32, i32) {
    %c0_i32 = arith.constant 0 : i32
    %c0_i32_0 = arith.constant 0 : i32
    %c0_i32_1 = arith.constant 0 : i32
    return %arg0, %c0_i32, %c0_i32_0 : i32, i32, i32
  }
}

</mosaic_0001>

<bundles_post_ra>
// kernel: tpu_custom_call.1
= control target key start
LH: loop header
LB: loop body
LE: loop exit
PB: predicated region body
PF: predicated region fallthrough
CT: control target
= control target key end

     0   :  { %8 = vsyncpa [#allocation3], 0  ;;  %s332_s0 = inlined_call_operand.hbm [shape: f32[2,8,256], index: 0, kind: input, shape index: {}]   ;;  %s333_s1 = inlined_call_operand.hbm [shape: f32[1,8,8], index: 1, kind: output, shape index: {0}]   ;;  %s334_s2 = inlined_call_operand.vmem [shape: f32[1,8,1], index: 2, kind: output, shape index: {1}]  }
   0x1   :  { %9 = vsyncpa [#allocation4], 0  ;;  %s270_s9 = smov [#allocation2]   ;;  %s222_s13 = scalar_lea.hbm %s332_s0, 512 }
   0x2   :  { %s15_s10 = sshll.u32 %s270_s9, 4  ;;  %p223_p0 = scmp.ne.s32.totalorder %s332_s0, %s222_s13  ;;  %s16_s10 = int_to_ptr.vmem [resolvable:$true] %s15_s10 }
   0x3   :  { %p226_p1 = scmp.lt.u32.totalorder %s222_s13, %s332_s0 }
   0x5   :  { %p228_p2 = pnand %p226_p1, %p223_p0 }
   0x7   :  { %231 = shalt.err (!%p228_p2)
}
   0x8   :  { %s232_s18 = scalar_lea.vmem %s16_s10, 512  ;;  %p237_p4 = scmp.lt.s32.totalorder %s16_s10, %s16_s10 }
   0x9   :  { %p233_p3 = scmp.ne.s32.totalorder %s16_s10, %s232_s18  ;;  %p238_p5 = scmp.lt.s32.totalorder %s232_s18, %s232_s18 }
   0xb   :  { %p239_p6 = por %p238_p5, %p237_p4 }
   0xd   :  { %p240_p7 = pnand %p239_p6, %p233_p3 }
   0xf   :  { %243 = shalt.err (!%p240_p7)
}
  0x10   :  { %s271_s19 = smov 256   ;;  %s272_s20 = smov 16  }
  0x11   :  { %21 = dma.hbm_to_vmem [thread:$0]  %s332_s0, 512, %s16_s10, [#allocation3], %s271_s19, %s271_s19, %s272_s20  }
  0x12   :  { %266 = dma.done.wait [#allocation3], 512  }
  0x13   :  { %267 = vsyncadd [#allocation3], 4294966784  ;;  %vm29_vm0 = vcmask 64512   ;;  %v273_v0 = vmov 0.0   ;;  %v34_v1 = vld [vmem:[#allocation2 + $0x8] sm:$0xff]  ;;  %v33_v2 = vld [vmem:[#allocation2] sm:$0xff] }
  0x14   :  { %30 = vst.msk [vmem:[#allocation5] sm:$0xff] %vm29_vm0, %v273_v0  ;;  %v118_v3 = vld [vmem:[#allocation2 + $0x18] sm:$0xff]  ;;  %36 = vmatprep.subr.mxu0 %v34_v1  ;;  %100 = vmatprep.mubr.f32.mxu0 %v34_v1  ;;  %v117_v4 = vld [vmem:[#allocation2 + $0x10] sm:$0xff]  ;;  %v110_v5 = vadd.f32 %v34_v1, %v33_v2  ;;  %vm31_vm1 = vcmask 7168   ;;  %s274_s4 = smov [#allocation5]  }
  0x15   :  { %37 = vmatpush1.xpose.msra.mxu0 %v33_v2  ;;  %120 = vmatprep.subr.mxu1 %v118_v3  ;;  %v193_v6 = vadd.f32 %v118_v3, %v117_v4  ;;  %32 = vst.msk [vmem:[%s334_s2] sm:$0xff] %vm31_vm1, %v273_v0  ;;  %s204_s5 = sshll.u32 %s274_s4, 4  ;;  %s205_s5 = int_to_ptr.vmem [resolvable:$true] %s204_s5 }
  0x16   :  { %121 = vmatpush1.xpose.msra.mxu1 %v117_v4  ;;  %184 = vmatprep.mubr.f32.mxu1 %v118_v3  ;;  %s244_s6 = scalar_lea.vmem %s205_s5, 128  ;;  %p249_p9 = scmp.lt.s32.totalorder %s205_s5, %s205_s5 }
  0x17   :  { %111 = vadd.xlane.f32.xlu0 %v110_v5  ;;  %p245_p8 = scmp.ne.s32.totalorder %s205_s5, %s244_s6  ;;  %p250_p10 = scmp.lt.s32.totalorder %s244_s6, %s244_s6 }
  0x18   :  { %101 = vmatmul.mubr.f32.vlgmr.msra.gmra.mrb[0].mxu0 %v33_v2 }
  0x19   :  { %185 = vmatmul.mubr.f32.vlgmr.msra.gmra.mrb[0].mxu1 %v117_v4  ;;  %p251_p11 = por %p250_p10, %p249_p9 }
  0x1b   :  { %194 = vadd.xlane.f32.xlu0 %v193_v6  ;;  %v35_v13 = vld [vmem:[#allocation5] sm:$0xff]  ;;  %p252_p12 = pnand %p251_p11, %p245_p8 }
  0x1c   :  { %v109_v7 = vld [vmem:[%s334_s2] sm:$0xff] }
  0xa4   :  { %v112_v8 = vpop.xlane.xlu0 %111 }
  0xa5   :  { %v113_v9 = vadd.f32 %v112_v8, %v109_v7 }
  0xa7   :  { %115 = vst.msk [vmem:[%s334_s2] sm:$0xff] %vm31_vm1, %v113_v9 }
  0xa8   :  { %v195_v10 = vpop.xlane.xlu0 %194 }
  0xae   :  { %v192_v11 = vld [vmem:[%s334_s2] sm:$0xff] }
  0xaf   :  { %v196_v12 = vadd.f32 %v195_v10, %v192_v11 }
  0xb1   :  { %197 = vst.msk [vmem:[%s334_s2] sm:$0xff] %vm31_vm1, %v196_v12 }
  0xeb   :  { %v102_v14 = vpop.f32.mrb[0].mxu0 }
  0xec   :  { %v106_v15 = vadd.f32 %v102_v14, %v35_v13  ;;  %v104_v16 = vpop.f32.mrb[1].mxu0  ;;  %v186_v17 = vpop.f32.mrb[0].mxu1 }
  0xed   :  { %v188_v18 = vpop.f32.mrb[1].mxu1 }
  0xee   :  { %108 = vst.msk [vmem:[#allocation5] sm:$0xff] %vm29_vm0, %v106_v15 }
  0xf5   :  { %v119_v19 = vld [vmem:[#allocation5] sm:$0xff] }
  0xf6   :  { %v190_v20 = vadd.f32 %v186_v17, %v119_v19 }
  0xf8   :  { %191 = vst.msk [vmem:[#allocation5] sm:$0xff] %vm29_vm0, %v190_v20 }
  0xf9   :  { %255 = shalt.err (!%p252_p12)
}
  0xfa   :  { %s256_s8 = scalar_lea.hbm %s333_s1, 128 }
  0xfb   :  { %p257_p13 = scmp.ne.s32.totalorder %s333_s1, %s256_s8  ;;  %p260_p0 = scmp.lt.u32.totalorder %s256_s8, %s333_s1 }
  0xfd   :  { %p262_p1 = pnand %p260_p0, %p257_p13 }
  0xff   :  { %265 = shalt.err (!%p262_p1)
}
 0x100   :  { %207 = dma.vmem_to_hbm [thread:$0]  %s205_s5, 128, %s333_s1, [#allocation4]  }
 0x101   :  { %268 = dma.done.wait [#allocation4], 128  }
 0x102   :  { %269 = vsyncadd [#allocation4], 4294967168 }
 0x103   :  { %215 = vsyncpa [#allocation3], 1 }
 0x104   :  { %216 = vsyncpa [#allocation4], 1 }

</bundles_post_ra>
